<compile_context>
chip_gen: v7x
topology: tpu7x:2x2x1
jax: 0.10.0
libtpu: 0.0.40
codegen_flags: <defaults>
</compile_context>

<pallas_src>
import functools

import jax
import jax.numpy as jnp
from jax import lax
from jax.experimental import pallas as pl
from jax.experimental.pallas import tpu as pltpu


def _round_up(x, m):
    return ((x + m - 1) // m) * m


def _pick_batch_block(n, max_nb=8):
    """Largest divisor of n that is <= max_nb (images processed per grid step)."""
    for nb in range(min(n, max_nb), 0, -1):
        if n % nb == 0:
            return nb
    return 1


def _sigmoid(x, approx=False):
    # exp -> EUP slot; reciprocal exact for the attention gate, approx (EUP) for the
    # full-tensor activation path.
    return pl.reciprocal(1.0 + jnp.exp(-x), approx=approx)


def _arm_kernel(xf_ref, wf_ref, bf_ref, atw_ref, atb_ref, poolw_ref,
                o_ref, win_ref, *, act, nb, cinp, wp, loutp):
    # Static unroll over the per-step batch block (nb is small and static).
    for b in range(nb):
        # 1) Window build: each 3x3 tap is a contiguous lane slice of the padded,
        #    row-major-flattened image at static offset kh*wp + kw.  9 sublane-aligned
        #    (cinp multiple of 8), lane-dense (loutp multiple of 128) stores.
        for kh in range(3):
            for kw in range(3):
                k = kh * 3 + kw
                win_ref[pl.ds(k * cinp, cinp), :] = \
                    xf_ref[b, :, pl.ds(kh * wp + kw, loutp)]

        # 2) Fused depthwise-3x3 + pointwise-1x1 conv: ONE MXU matmul + folded bias.
        y = jnp.dot(wf_ref[...], win_ref[...], preferred_element_type=jnp.float32)
        y = y + bf_ref[...]                                           # (Fp, loutp)
        if act == "relu":
            y = jnp.maximum(y, 0.0)
        elif act == "leakyrelu":
            y = jnp.where(y >= 0.0, y, 0.01 * y)
        elif act == "sigmoid":
            y = _sigmoid(y, approx=True)
        else:
            raise ValueError(act)

        # 3) Pool-first channel attention: per-image mean over the real pixels (poolw
        #    is 0 on junk pad lanes, 1/(H*W) elsewhere), then a tiny (Fp,Fp)@(Fp,1)
        #    matvec + exact sigmoid.
        p = jnp.sum(y * poolw_ref[...], axis=1, keepdims=True)        # (Fp, 1)
        a = _sigmoid(jnp.dot(atw_ref[...], p, preferred_element_type=jnp.float32)
                     + atb_ref[...])                                  # (Fp, 1)

        # 4) Rescale and store the lane-dense (Fp, loutp) block.
        o_ref[b, :, :] = (y * a).astype(o_ref.dtype)


def attention_refinement_module(x_nchw, dw_w, dw_b, pw_w, pw_b, at_w, at_b,
                                act="relu", compute_dtype=jnp.float32, max_nb=8):
    """PyTorch-layout params: dw_w (Cin,1,3,3), dw_b (Cin,), pw_w (F,Cin,1,1),
    pw_b (F,), at_w (F,F,1,1), at_b (F,).  Input/output NCHW."""
    if act not in ("relu", "leakyrelu", "sigmoid"):
        raise ValueError(act)
    n, cin, h, w = x_nchw.shape
    f = pw_w.shape[0]

    itemsize = jnp.dtype(compute_dtype).itemsize
    sub = 8 if itemsize == 4 else 16          # sublane tile for the window dtype
    cinp = _round_up(cin, sub)                # sublane-aligned channel count
    fp = _round_up(f, 8)                      # output rows (f32) sublane-aligned
    wp = w + 2                                # 'same'-padded row width
    lout = h * wp                             # real flattened output length per image
    loutp = _round_up(lout, 128)              # lane-dense flattened length
    lin_p = loutp + 2 * wp + 2                # exact padded-flat input length needed
    nb = _pick_batch_block(n, max_nb)         # images per grid step

    fdt = jnp.float32

    # ---- Host-side parameter folding (done once) ----------------------------
    dw9 = dw_w[:, 0].transpose(1, 2, 0).reshape(9, cin).astype(fdt)        # [k, c]
    pwm = pw_w[:, :, 0, 0].astype(fdt)                                     # (F, Cin)
    wf3 = dw9[None, :, :] * pwm[:, None, :]                                # (F, 9, Cin)
    wf = jnp.pad(wf3, ((0, fp - f), (0, 0), (0, cinp - cin))) \
            .reshape(fp, 9 * cinp).astype(compute_dtype)                   # (Fp, 9*Cinp)
    bf = jnp.pad(pwm @ dw_b.astype(fdt) + pw_b.astype(fdt),
                 (0, fp - f)).reshape(fp, 1)                               # (Fp, 1)
    atw = jnp.pad(at_w[:, :, 0, 0].astype(fdt),
                  ((0, fp - f), (0, fp - f)))                              # (Fp, Fp)
    atb = jnp.pad(at_b.astype(fdt), (0, fp - f)).reshape(fp, 1)            # (Fp, 1)

    # Pool weights over the lane-padded flat spatial axis (zero on junk lanes).
    q = jnp.arange(loutp)
    poolw = jnp.where((q < lout) & ((q % wp) < w), 1.0 / (h * w), 0.0) \
               .astype(fdt).reshape(1, loutp)

    # ---- Input: channel zero-pad to cinp, one spatial zero-pad, flatten ----
    xpad = jnp.pad(x_nchw.astype(compute_dtype),
                   ((0, 0), (0, cinp - cin), (1, 1), (1, 1)))   # (N, Cinp, H+2, Wp)
    xf = xpad.reshape(n, cinp, (h + 2) * wp)
    xf = jnp.pad(xf, ((0, 0), (0, 0), (0, lin_p - (h + 2) * wp)))

    # ---- VMEM budget (double-buffered pipelined blocks + scratch + constants) ----
    xf_b = nb * cinp * lin_p * itemsize
    out_b = nb * fp * loutp * 4
    win_b = 9 * cinp * loutp * itemsize
    cst_b = (fp * 9 * cinp) * itemsize + (fp + fp * fp + fp + loutp) * 4
    vmem_limit = max(32 << 20, int(1.25 * (2 * xf_b + 2 * out_b + win_b + 2 * cst_b)))

    out_flat = pl.pallas_call(
        functools.partial(_arm_kernel, act=act, nb=nb, cinp=cinp, wp=wp, loutp=loutp),
        out_shape=jax.ShapeDtypeStruct((n, fp, loutp), jnp.float32),
        grid_spec=pltpu.PrefetchScalarGridSpec(
            num_scalar_prefetch=0,
            grid=(n // nb,),
            in_specs=[
                pl.BlockSpec((nb, cinp, lin_p), lambda i: (i, 0, 0)),  # padded images
                pl.BlockSpec((fp, 9 * cinp), lambda i: (0, 0)),        # fused conv W
                pl.BlockSpec((fp, 1), lambda i: (0, 0)),               # fused conv b
                pl.BlockSpec((fp, fp), lambda i: (0, 0)),              # attention W
                pl.BlockSpec((fp, 1), lambda i: (0, 0)),               # attention b
                pl.BlockSpec((1, loutp), lambda i: (0, 0)),            # pool weights
            ],
            out_specs=pl.BlockSpec((nb, fp, loutp), lambda i: (i, 0, 0)),
            scratch_shapes=[pltpu.VMEM((9 * cinp, loutp), compute_dtype)],
        ),
        compiler_params=pltpu.CompilerParams(
            dimension_semantics=("parallel",),
            vmem_limit_bytes=vmem_limit),
    )(xf, wf, bf, atw, atb, poolw)

    # Drop padded channels / lanes; contiguous reshape, no transpose.
    return out_flat[:, :f, :lout].reshape(n, f, h, wp)[:, :, :, :w]


def _reference(x, dw_w_t, dw_b, pw_w_t, pw_b, at_w_t, at_b):
    """Pure-JAX reference with PyTorch-layout weights (OIHW), act='relu'."""
    cin = x.shape[1]
    dn = ("NCHW", "OIHW", "NCHW")
    y = lax.conv_general_dilated(x, dw_w_t, (1, 1), ((1, 1), (1, 1)),
                                 feature_group_count=cin, dimension_numbers=dn)
    y = y + dw_b.reshape(1, -1, 1, 1)
    y = lax.conv_general_dilated(y, pw_w_t, (1, 1), ((0, 0), (0, 0)),
                                 dimension_numbers=dn)
    y = jnp.maximum(y + pw_b.reshape(1, -1, 1, 1), 0.0)
    p = jnp.mean(y, axis=(2, 3), keepdims=True)
    a = lax.conv_general_dilated(p, at_w_t, (1, 1), ((0, 0), (0, 0)),
                                 dimension_numbers=dn)
    a = jax.nn.sigmoid(a + at_b.reshape(1, -1, 1, 1))
    return y * a


if __name__ == "__main__":
    N, Cin, F, H, W = 2, 4, 8, 16, 16

    key = jax.random.PRNGKey(0)
    keys = jax.random.split(key, 7)
    x = jax.random.normal(keys[0], (N, Cin, H, W), jnp.float32)

    # Deterministic parameter init in PyTorch (OIHW) convention.
    dw_w_t = jax.random.normal(keys[1], (Cin, 1, 3, 3), jnp.float32) * 0.2
    dw_b   = jax.random.normal(keys[2], (Cin,), jnp.float32) * 0.1
    pw_w_t = jax.random.normal(keys[3], (F, Cin, 1, 1), jnp.float32) * 0.2
    pw_b   = jax.random.normal(keys[4], (F,), jnp.float32) * 0.1
    at_w_t = jax.random.normal(keys[5], (F, F, 1, 1), jnp.float32) * 0.2
    at_b   = jax.random.normal(keys[6], (F,), jnp.float32) * 0.1

    out = attention_refinement_module(x, dw_w_t, dw_b, pw_w_t, pw_b, at_w_t, at_b,
                                      act="relu")
    out = jax.block_until_ready(out)

    ref = _reference(x, dw_w_t, dw_b, pw_w_t, pw_b, at_w_t, at_b)
    ref = jax.block_until_ready(ref)

    assert out.shape == (N, F, H, W), out.shape
    assert jnp.allclose(out, ref, atol=1e-4, rtol=1e-4), float(jnp.max(jnp.abs(out - ref)))
    print("KERNEL_OK")
</pallas_src>

<mosaic_0001>
module attributes {stable_mosaic.version = 11 : i64} {
  func.func @_arm_kernel(%arg0: i32, %arg1: memref<2x8x422xf32, #tpu.memory_space<vmem>>, %arg2: memref<8x72xf32, #tpu.memory_space<vmem>>, %arg3: memref<8x1xf32, #tpu.memory_space<vmem>>, %arg4: memref<8x8xf32, #tpu.memory_space<vmem>>, %arg5: memref<8x1xf32, #tpu.memory_space<vmem>>, %arg6: memref<1x384xf32, #tpu.memory_space<vmem>>, %arg7: memref<2x8x384xf32, #tpu.memory_space<vmem>>, %arg8: memref<72x384xf32, #tpu.memory_space<vmem>>) attributes {dimension_semantics = [#tpu.dimension_semantics<parallel>], iteration_bounds = array<i64: 1>, scalar_prefetch = 0 : i64, scratch_operands = 1 : i64, tpu.core_type = #tpu.core_type<tc>, window_params = [{transform_indices = @transform_0, window_bounds = array<i64: 2, 8, 422>}, {pipeline_mode = #tpu.pipeline_mode<synchronous>, transform_indices = @transform_1, window_bounds = array<i64: 8, 72>}, {pipeline_mode = #tpu.pipeline_mode<synchronous>, transform_indices = @transform_2, window_bounds = array<i64: 8, 1>}, {pipeline_mode = #tpu.pipeline_mode<synchronous>, transform_indices = @transform_3, window_bounds = array<i64: 8, 8>}, {pipeline_mode = #tpu.pipeline_mode<synchronous>, transform_indices = @transform_4, window_bounds = array<i64: 8, 1>}, {pipeline_mode = #tpu.pipeline_mode<synchronous>, transform_indices = @transform_5, window_bounds = array<i64: 1, 384>}, {transform_indices = @transform_6, window_bounds = array<i64: 2, 8, 384>}]} {
    %c0 = arith.constant 0 : index
    %c0_0 = arith.constant 0 : index
    %c0_1 = arith.constant 0 : index
    %0 = vector.load %arg1[%c0, %c0_0, %c0_1] : memref<2x8x422xf32, #tpu.memory_space<vmem>>, vector<1x8x384xf32>
    %1 = vector.shape_cast %0 : vector<1x8x384xf32> to vector<8x384xf32>
    %c0_2 = arith.constant 0 : index
    %c0_3 = arith.constant 0 : index
    %2 = vector.load %arg8[%c0_2, %c0_3] : memref<72x384xf32, #tpu.memory_space<vmem>>, vector<8x384xf32>
    tpu.vector_store %arg8[%c0_2, %c0_3], %1 {strides = array<i32>} : memref<72x384xf32, #tpu.memory_space<vmem>>, vector<8x384xf32>,
    %c0_4 = arith.constant 0 : index
    %c0_5 = arith.constant 0 : index
    %c1 = arith.constant 1 : index
    %3 = vector.load %arg1[%c0_4, %c0_5, %c1] : memref<2x8x422xf32, #tpu.memory_space<vmem>>, vector<1x8x384xf32>
    %4 = vector.shape_cast %3 : vector<1x8x384xf32> to vector<8x384xf32>
    %c8 = arith.constant 8 : index
    %c0_6 = arith.constant 0 : index
    %5 = vector.load %arg8[%c8, %c0_6] : memref<72x384xf32, #tpu.memory_space<vmem>>, vector<8x384xf32>
    tpu.vector_store %arg8[%c8, %c0_6], %4 {strides = array<i32>} : memref<72x384xf32, #tpu.memory_space<vmem>>, vector<8x384xf32>,
    %c0_7 = arith.constant 0 : index
    %c0_8 = arith.constant 0 : index
    %c2 = arith.constant 2 : index
    %6 = vector.load %arg1[%c0_7, %c0_8, %c2] : memref<2x8x422xf32, #tpu.memory_space<vmem>>, vector<1x8x384xf32>
    %7 = vector.shape_cast %6 : vector<1x8x384xf32> to vector<8x384xf32>
    %c16 = arith.constant 16 : index
    %c0_9 = arith.constant 0 : index
    %8 = vector.load %arg8[%c16, %c0_9] : memref<72x384xf32, #tpu.memory_space<vmem>>, vector<8x384xf32>
    tpu.vector_store %arg8[%c16, %c0_9], %7 {strides = array<i32>} : memref<72x384xf32, #tpu.memory_space<vmem>>, vector<8x384xf32>,
    %c0_10 = arith.constant 0 : index
    %c0_11 = arith.constant 0 : index
    %c18 = arith.constant 18 : index
    %9 = vector.load %arg1[%c0_10, %c0_11, %c18] : memref<2x8x422xf32, #tpu.memory_space<vmem>>, vector<1x8x384xf32>
    %10 = vector.shape_cast %9 : vector<1x8x384xf32> to vector<8x384xf32>
    %c24 = arith.constant 24 : index
    %c0_12 = arith.constant 0 : index
    %11 = vector.load %arg8[%c24, %c0_12] : memref<72x384xf32, #tpu.memory_space<vmem>>, vector<8x384xf32>
    tpu.vector_store %arg8[%c24, %c0_12], %10 {strides = array<i32>} : memref<72x384xf32, #tpu.memory_space<vmem>>, vector<8x384xf32>,
    %c0_13 = arith.constant 0 : index
    %c0_14 = arith.constant 0 : index
    %c19 = arith.constant 19 : index
    %12 = vector.load %arg1[%c0_13, %c0_14, %c19] : memref<2x8x422xf32, #tpu.memory_space<vmem>>, vector<1x8x384xf32>
    %13 = vector.shape_cast %12 : vector<1x8x384xf32> to vector<8x384xf32>
    %c32 = arith.constant 32 : index
    %c0_15 = arith.constant 0 : index
    %14 = vector.load %arg8[%c32, %c0_15] : memref<72x384xf32, #tpu.memory_space<vmem>>, vector<8x384xf32>
    tpu.vector_store %arg8[%c32, %c0_15], %13 {strides = array<i32>} : memref<72x384xf32, #tpu.memory_space<vmem>>, vector<8x384xf32>,
    %c0_16 = arith.constant 0 : index
    %c0_17 = arith.constant 0 : index
    %c20 = arith.constant 20 : index
    %15 = vector.load %arg1[%c0_16, %c0_17, %c20] : memref<2x8x422xf32, #tpu.memory_space<vmem>>, vector<1x8x384xf32>
    %16 = vector.shape_cast %15 : vector<1x8x384xf32> to vector<8x384xf32>
    %c40 = arith.constant 40 : index
    %c0_18 = arith.constant 0 : index
    %17 = vector.load %arg8[%c40, %c0_18] : memref<72x384xf32, #tpu.memory_space<vmem>>, vector<8x384xf32>
    tpu.vector_store %arg8[%c40, %c0_18], %16 {strides = array<i32>} : memref<72x384xf32, #tpu.memory_space<vmem>>, vector<8x384xf32>,
    %c0_19 = arith.constant 0 : index
    %c0_20 = arith.constant 0 : index
    %c36 = arith.constant 36 : index
    %18 = vector.load %arg1[%c0_19, %c0_20, %c36] : memref<2x8x422xf32, #tpu.memory_space<vmem>>, vector<1x8x384xf32>
    %19 = vector.shape_cast %18 : vector<1x8x384xf32> to vector<8x384xf32>
    %c48 = arith.constant 48 : index
    %c0_21 = arith.constant 0 : index
    %20 = vector.load %arg8[%c48, %c0_21] : memref<72x384xf32, #tpu.memory_space<vmem>>, vector<8x384xf32>
    tpu.vector_store %arg8[%c48, %c0_21], %19 {strides = array<i32>} : memref<72x384xf32, #tpu.memory_space<vmem>>, vector<8x384xf32>,
    %c0_22 = arith.constant 0 : index
    %c0_23 = arith.constant 0 : index
    %c37 = arith.constant 37 : index
    %21 = vector.load %arg1[%c0_22, %c0_23, %c37] : memref<2x8x422xf32, #tpu.memory_space<vmem>>, vector<1x8x384xf32>
    %22 = vector.shape_cast %21 : vector<1x8x384xf32> to vector<8x384xf32>
    %c56 = arith.constant 56 : index
    %c0_24 = arith.constant 0 : index
    %23 = vector.load %arg8[%c56, %c0_24] : memref<72x384xf32, #tpu.memory_space<vmem>>, vector<8x384xf32>
    tpu.vector_store %arg8[%c56, %c0_24], %22 {strides = array<i32>} : memref<72x384xf32, #tpu.memory_space<vmem>>, vector<8x384xf32>,
    %c0_25 = arith.constant 0 : index
    %c0_26 = arith.constant 0 : index
    %c38 = arith.constant 38 : index
    %24 = vector.load %arg1[%c0_25, %c0_26, %c38] : memref<2x8x422xf32, #tpu.memory_space<vmem>>, vector<1x8x384xf32>
    %25 = vector.shape_cast %24 : vector<1x8x384xf32> to vector<8x384xf32>
    %c64 = arith.constant 64 : index
    %c0_27 = arith.constant 0 : index
    %26 = vector.load %arg8[%c64, %c0_27] : memref<72x384xf32, #tpu.memory_space<vmem>>, vector<8x384xf32>
    tpu.vector_store %arg8[%c64, %c0_27], %25 {strides = array<i32>} : memref<72x384xf32, #tpu.memory_space<vmem>>, vector<8x384xf32>,
    %c0_28 = arith.constant 0 : index
    %c0_29 = arith.constant 0 : index
    %27 = vector.load %arg2[%c0_28, %c0_29] : memref<8x72xf32, #tpu.memory_space<vmem>>, vector<8x72xf32>
    %c0_30 = arith.constant 0 : index
    %c0_31 = arith.constant 0 : index
    %28 = vector.load %arg8[%c0_30, %c0_31] : memref<72x384xf32, #tpu.memory_space<vmem>>, vector<72x384xf32>
    %cst = arith.constant dense<0.000000e+00> : vector<8x384xf32>
    %29 = tpu.matmul %27, %28, %cst {dimension_numbers = #tpu.dot_dimension_numbers<[1], [0], [0], [1], [0, 0, 1, 1], [], []>} : vector<8x72xf32>, vector<72x384xf32>, vector<8x384xf32> -> vector<8x384xf32>
    %c0_32 = arith.constant 0 : index
    %c0_33 = arith.constant 0 : index
    %30 = vector.load %arg3[%c0_32, %c0_33] : memref<8x1xf32, #tpu.memory_space<vmem>>, vector<8x1xf32>
    %31 = vector.broadcast %30 : vector<8x1xf32> to vector<8x384xf32>
    %32 = arith.addf %29, %31 : vector<8x384xf32>
    %cst_34 = arith.constant 0.000000e+00 : f32
    %33 = vector.broadcast %cst_34 : f32 to vector<8x384xf32>
    %34 = arith.maximumf %32, %33 : vector<8x384xf32>
    %c0_35 = arith.constant 0 : index
    %c0_36 = arith.constant 0 : index
    %35 = vector.load %arg6[%c0_35, %c0_36] : memref<1x384xf32, #tpu.memory_space<vmem>>, vector<1x384xf32>
    %36 = vector.broadcast %35 : vector<1x384xf32> to vector<8x384xf32>
    %37 = arith.mulf %34, %36 : vector<8x384xf32>
    %cst_37 = arith.constant dense<0.000000e+00> : vector<8xf32>
    %38 = vector.multi_reduction <add>, %37, %cst_37 [1] : vector<8x384xf32> to vector<8xf32>
    %39 = vector.shape_cast %38 : vector<8xf32> to vector<8x1xf32>
    %c0_38 = arith.constant 0 : index
    %c0_39 = arith.constant 0 : index
    %40 = vector.load %arg4[%c0_38, %c0_39] : memref<8x8xf32, #tpu.memory_space<vmem>>, vector<8x8xf32>
    %cst_40 = arith.constant dense<0.000000e+00> : vector<8x1xf32>
    %41 = tpu.matmul %40, %39, %cst_40 {dimension_numbers = #tpu.dot_dimension_numbers<[1], [0], [0], [1], [0, 0, 1, 1], [], []>} : vector<8x8xf32>, vector<8x1xf32>, vector<8x1xf32> -> vector<8x1xf32>
    %c0_41 = arith.constant 0 : index
    %c0_42 = arith.constant 0 : index
    %42 = vector.load %arg5[%c0_41, %c0_42] : memref<8x1xf32, #tpu.memory_space<vmem>>, vector<8x1xf32>
    %43 = arith.addf %41, %42 : vector<8x1xf32>
    %cst_43 = arith.constant 0.000000e+00 : f32
    %44 = vector.broadcast %cst_43 : f32 to vector<8x1xf32>
    %45 = arith.subf %44, %43 : vector<8x1xf32>
    %46 = math.exp %45 : vector<8x1xf32>
    %cst_44 = arith.constant 1.000000e+00 : f32
    %47 = vector.broadcast %cst_44 : f32 to vector<8x1xf32>
    %48 = arith.addf %47, %46 : vector<8x1xf32>
    %49 = tpu.reciprocal %48 : vector<8x1xf32> -> vector<8x1xf32>
    %50 = vector.broadcast %49 : vector<8x1xf32> to vector<8x384xf32>
    %51 = arith.mulf %34, %50 : vector<8x384xf32>
    %c0_45 = arith.constant 0 : index
    %c0_46 = arith.constant 0 : index
    %c0_47 = arith.constant 0 : index
    %52 = vector.load %arg7[%c0_45, %c0_46, %c0_47] : memref<2x8x384xf32, #tpu.memory_space<vmem>>, vector<1x8x384xf32>
    %53 = vector.shape_cast %52 : vector<1x8x384xf32> to vector<8x384xf32>
    %54 = vector.shape_cast %51 : vector<8x384xf32> to vector<1x8x384xf32>
    tpu.vector_store %arg7[%c0_45, %c0_46, %c0_47], %54 {strides = array<i32>} : memref<2x8x384xf32, #tpu.memory_space<vmem>>, vector<1x8x384xf32>,
    %c1_48 = arith.constant 1 : index
    %c0_49 = arith.constant 0 : index
    %c0_50 = arith.constant 0 : index
    %55 = vector.load %arg1[%c1_48, %c0_49, %c0_50] : memref<2x8x422xf32, #tpu.memory_space<vmem>>, vector<1x8x384xf32>
    %56 = vector.shape_cast %55 : vector<1x8x384xf32> to vector<8x384xf32>
    %c0_51 = arith.constant 0 : index
    %c0_52 = arith.constant 0 : index
    %57 = vector.load %arg8[%c0_51, %c0_52] : memref<72x384xf32, #tpu.memory_space<vmem>>, vector<8x384xf32>
    tpu.vector_store %arg8[%c0_51, %c0_52], %56 {strides = array<i32>} : memref<72x384xf32, #tpu.memory_space<vmem>>, vector<8x384xf32>,
    %c1_53 = arith.constant 1 : index
    %c0_54 = arith.constant 0 : index
    %c1_55 = arith.constant 1 : index
    %58 = vector.load %arg1[%c1_53, %c0_54, %c1_55] : memref<2x8x422xf32, #tpu.memory_space<vmem>>, vector<1x8x384xf32>
    %59 = vector.shape_cast %58 : vector<1x8x384xf32> to vector<8x384xf32>
    %c8_56 = arith.constant 8 : index
    %c0_57 = arith.constant 0 : index
    %60 = vector.load %arg8[%c8_56, %c0_57] : memref<72x384xf32, #tpu.memory_space<vmem>>, vector<8x384xf32>
    tpu.vector_store %arg8[%c8_56, %c0_57], %59 {strides = array<i32>} : memref<72x384xf32, #tpu.memory_space<vmem>>, vector<8x384xf32>,
    %c1_58 = arith.constant 1 : index
    %c0_59 = arith.constant 0 : index
    %c2_60 = arith.constant 2 : index
    %61 = vector.load %arg1[%c1_58, %c0_59, %c2_60] : memref<2x8x422xf32, #tpu.memory_space<vmem>>, vector<1x8x384xf32>
    %62 = vector.shape_cast %61 : vector<1x8x384xf32> to vector<8x384xf32>
    %c16_61 = arith.constant 16 : index
    %c0_62 = arith.constant 0 : index
    %63 = vector.load %arg8[%c16_61, %c0_62] : memref<72x384xf32, #tpu.memory_space<vmem>>, vector<8x384xf32>
    tpu.vector_store %arg8[%c16_61, %c0_62], %62 {strides = array<i32>} : memref<72x384xf32, #tpu.memory_space<vmem>>, vector<8x384xf32>,
    %c1_63 = arith.constant 1 : index
    %c0_64 = arith.constant 0 : index
    %c18_65 = arith.constant 18 : index
    %64 = vector.load %arg1[%c1_63, %c0_64, %c18_65] : memref<2x8x422xf32, #tpu.memory_space<vmem>>, vector<1x8x384xf32>
    %65 = vector.shape_cast %64 : vector<1x8x384xf32> to vector<8x384xf32>
    %c24_66 = arith.constant 24 : index
    %c0_67 = arith.constant 0 : index
    %66 = vector.load %arg8[%c24_66, %c0_67] : memref<72x384xf32, #tpu.memory_space<vmem>>, vector<8x384xf32>
    tpu.vector_store %arg8[%c24_66, %c0_67], %65 {strides = array<i32>} : memref<72x384xf32, #tpu.memory_space<vmem>>, vector<8x384xf32>,
    %c1_68 = arith.constant 1 : index
    %c0_69 = arith.constant 0 : index
    %c19_70 = arith.constant 19 : index
    %67 = vector.load %arg1[%c1_68, %c0_69, %c19_70] : memref<2x8x422xf32, #tpu.memory_space<vmem>>, vector<1x8x384xf32>
    %68 = vector.shape_cast %67 : vector<1x8x384xf32> to vector<8x384xf32>
    %c32_71 = arith.constant 32 : index
    %c0_72 = arith.constant 0 : index
    %69 = vector.load %arg8[%c32_71, %c0_72] : memref<72x384xf32, #tpu.memory_space<vmem>>, vector<8x384xf32>
    tpu.vector_store %arg8[%c32_71, %c0_72], %68 {strides = array<i32>} : memref<72x384xf32, #tpu.memory_space<vmem>>, vector<8x384xf32>,
    %c1_73 = arith.constant 1 : index
    %c0_74 = arith.constant 0 : index
    %c20_75 = arith.constant 20 : index
    %70 = vector.load %arg1[%c1_73, %c0_74, %c20_75] : memref<2x8x422xf32, #tpu.memory_space<vmem>>, vector<1x8x384xf32>
    %71 = vector.shape_cast %70 : vector<1x8x384xf32> to vector<8x384xf32>
    %c40_76 = arith.constant 40 : index
    %c0_77 = arith.constant 0 : index
    %72 = vector.load %arg8[%c40_76, %c0_77] : memref<72x384xf32, #tpu.memory_space<vmem>>, vector<8x384xf32>
    tpu.vector_store %arg8[%c40_76, %c0_77], %71 {strides = array<i32>} : memref<72x384xf32, #tpu.memory_space<vmem>>, vector<8x384xf32>,
    %c1_78 = arith.constant 1 : index
    %c0_79 = arith.constant 0 : index
    %c36_80 = arith.constant 36 : index
    %73 = vector.load %arg1[%c1_78, %c0_79, %c36_80] : memref<2x8x422xf32, #tpu.memory_space<vmem>>, vector<1x8x384xf32>
    %74 = vector.shape_cast %73 : vector<1x8x384xf32> to vector<8x384xf32>
    %c48_81 = arith.constant 48 : index
    %c0_82 = arith.constant 0 : index
    %75 = vector.load %arg8[%c48_81, %c0_82] : memref<72x384xf32, #tpu.memory_space<vmem>>, vector<8x384xf32>
    tpu.vector_store %arg8[%c48_81, %c0_82], %74 {strides = array<i32>} : memref<72x384xf32, #tpu.memory_space<vmem>>, vector<8x384xf32>,
    %c1_83 = arith.constant 1 : index
    %c0_84 = arith.constant 0 : index
    %c37_85 = arith.constant 37 : index
    %76 = vector.load %arg1[%c1_83, %c0_84, %c37_85] : memref<2x8x422xf32, #tpu.memory_space<vmem>>, vector<1x8x384xf32>
    %77 = vector.shape_cast %76 : vector<1x8x384xf32> to vector<8x384xf32>
    %c56_86 = arith.constant 56 : index
    %c0_87 = arith.constant 0 : index
    %78 = vector.load %arg8[%c56_86, %c0_87] : memref<72x384xf32, #tpu.memory_space<vmem>>, vector<8x384xf32>
    tpu.vector_store %arg8[%c56_86, %c0_87], %77 {strides = array<i32>} : memref<72x384xf32, #tpu.memory_space<vmem>>, vector<8x384xf32>,
    %c1_88 = arith.constant 1 : index
    %c0_89 = arith.constant 0 : index
    %c38_90 = arith.constant 38 : index
    %79 = vector.load %arg1[%c1_88, %c0_89, %c38_90] : memref<2x8x422xf32, #tpu.memory_space<vmem>>, vector<1x8x384xf32>
    %80 = vector.shape_cast %79 : vector<1x8x384xf32> to vector<8x384xf32>
    %c64_91 = arith.constant 64 : index
    %c0_92 = arith.constant 0 : index
    %81 = vector.load %arg8[%c64_91, %c0_92] : memref<72x384xf32, #tpu.memory_space<vmem>>, vector<8x384xf32>
    tpu.vector_store %arg8[%c64_91, %c0_92], %80 {strides = array<i32>} : memref<72x384xf32, #tpu.memory_space<vmem>>, vector<8x384xf32>,
    %c0_93 = arith.constant 0 : index
    %c0_94 = arith.constant 0 : index
    %82 = vector.load %arg2[%c0_93, %c0_94] : memref<8x72xf32, #tpu.memory_space<vmem>>, vector<8x72xf32>
    %c0_95 = arith.constant 0 : index
    %c0_96 = arith.constant 0 : index
    %83 = vector.load %arg8[%c0_95, %c0_96] : memref<72x384xf32, #tpu.memory_space<vmem>>, vector<72x384xf32>
    %cst_97 = arith.constant dense<0.000000e+00> : vector<8x384xf32>
    %84 = tpu.matmul %82, %83, %cst_97 {dimension_numbers = #tpu.dot_dimension_numbers<[1], [0], [0], [1], [0, 0, 1, 1], [], []>} : vector<8x72xf32>, vector<72x384xf32>, vector<8x384xf32> -> vector<8x384xf32>
    %c0_98 = arith.constant 0 : index
    %c0_99 = arith.constant 0 : index
    %85 = vector.load %arg3[%c0_98, %c0_99] : memref<8x1xf32, #tpu.memory_space<vmem>>, vector<8x1xf32>
    %86 = vector.broadcast %85 : vector<8x1xf32> to vector<8x384xf32>
    %87 = arith.addf %84, %86 : vector<8x384xf32>
    %cst_100 = arith.constant 0.000000e+00 : f32
    %88 = vector.broadcast %cst_100 : f32 to vector<8x384xf32>
    %89 = arith.maximumf %87, %88 : vector<8x384xf32>
    %c0_101 = arith.constant 0 : index
    %c0_102 = arith.constant 0 : index
    %90 = vector.load %arg6[%c0_101, %c0_102] : memref<1x384xf32, #tpu.memory_space<vmem>>, vector<1x384xf32>
    %91 = vector.broadcast %90 : vector<1x384xf32> to vector<8x384xf32>
    %92 = arith.mulf %89, %91 : vector<8x384xf32>
    %cst_103 = arith.constant dense<0.000000e+00> : vector<8xf32>
    %93 = vector.multi_reduction <add>, %92, %cst_103 [1] : vector<8x384xf32> to vector<8xf32>
    %94 = vector.shape_cast %93 : vector<8xf32> to vector<8x1xf32>
    %c0_104 = arith.constant 0 : index
    %c0_105 = arith.constant 0 : index
    %95 = vector.load %arg4[%c0_104, %c0_105] : memref<8x8xf32, #tpu.memory_space<vmem>>, vector<8x8xf32>
    %cst_106 = arith.constant dense<0.000000e+00> : vector<8x1xf32>
    %96 = tpu.matmul %95, %94, %cst_106 {dimension_numbers = #tpu.dot_dimension_numbers<[1], [0], [0], [1], [0, 0, 1, 1], [], []>} : vector<8x8xf32>, vector<8x1xf32>, vector<8x1xf32> -> vector<8x1xf32>
    %c0_107 = arith.constant 0 : index
    %c0_108 = arith.constant 0 : index
    %97 = vector.load %arg5[%c0_107, %c0_108] : memref<8x1xf32, #tpu.memory_space<vmem>>, vector<8x1xf32>
    %98 = arith.addf %96, %97 : vector<8x1xf32>
    %cst_109 = arith.constant 0.000000e+00 : f32
    %99 = vector.broadcast %cst_109 : f32 to vector<8x1xf32>
    %100 = arith.subf %99, %98 : vector<8x1xf32>
    %101 = math.exp %100 : vector<8x1xf32>
    %cst_110 = arith.constant 1.000000e+00 : f32
    %102 = vector.broadcast %cst_110 : f32 to vector<8x1xf32>
    %103 = arith.addf %102, %101 : vector<8x1xf32>
    %104 = tpu.reciprocal %103 : vector<8x1xf32> -> vector<8x1xf32>
    %105 = vector.broadcast %104 : vector<8x1xf32> to vector<8x384xf32>
    %106 = arith.mulf %89, %105 : vector<8x384xf32>
    %c1_111 = arith.constant 1 : index
    %c0_112 = arith.constant 0 : index
    %c0_113 = arith.constant 0 : index
    %107 = vector.load %arg7[%c1_111, %c0_112, %c0_113] : memref<2x8x384xf32, #tpu.memory_space<vmem>>, vector<1x8x384xf32>
    %108 = vector.shape_cast %107 : vector<1x8x384xf32> to vector<8x384xf32>
    %109 = vector.shape_cast %106 : vector<8x384xf32> to vector<1x8x384xf32>
    tpu.vector_store %arg7[%c1_111, %c0_112, %c0_113], %109 {strides = array<i32>} : memref<2x8x384xf32, #tpu.memory_space<vmem>>, vector<1x8x384xf32>,
    return
  }
  func.func @transform_0(%arg0: i32) -> (i32, i32, i32) {
    %c0_i32 = arith.constant 0 : i32
    %c0_i32_0 = arith.constant 0 : i32
    %c0_i32_1 = arith.constant 0 : i32
    return %arg0, %c0_i32, %c0_i32_0 : i32, i32, i32
  }
  func.func @transform_1(%arg0: i32) -> (i32, i32) {
    %c0_i32 = arith.constant 0 : i32
    %c0_i32_0 = arith.constant 0 : i32
    %c0_i32_1 = arith.constant 0 : i32
    return %c0_i32, %c0_i32_0 : i32, i32
  }
  func.func @transform_2(%arg0: i32) -> (i32, i32) {
    %c0_i32 = arith.constant 0 : i32
    %c0_i32_0 = arith.constant 0 : i32
    %c0_i32_1 = arith.constant 0 : i32
    return %c0_i32, %c0_i32_0 : i32, i32
  }
  func.func @transform_3(%arg0: i32) -> (i32, i32) {
    %c0_i32 = arith.constant 0 : i32
    %c0_i32_0 = arith.constant 0 : i32
    %c0_i32_1 = arith.constant 0 : i32
    return %c0_i32, %c0_i32_0 : i32, i32
  }
  func.func @transform_4(%arg0: i32) -> (i32, i32) {
    %c0_i32 = arith.constant 0 : i32
    %c0_i32_0 = arith.constant 0 : i32
    %c0_i32_1 = arith.constant 0 : i32
    return %c0_i32, %c0_i32_0 : i32, i32
  }
  func.func @transform_5(%arg0: i32) -> (i32, i32) {
    %c0_i32 = arith.constant 0 : i32
    %c0_i32_0 = arith.constant 0 : i32
    %c0_i32_1 = arith.constant 0 : i32
    return %c0_i32, %c0_i32_0 : i32, i32
  }
  func.func @transform_6(%arg0: i32) -> (i32, i32, i32) {
    %c0_i32 = arith.constant 0 : i32
    %c0_i32_0 = arith.constant 0 : i32
    %c0_i32_1 = arith.constant 0 : i32
    return %arg0, %c0_i32, %c0_i32_0 : i32, i32, i32
  }
}

</mosaic_0001>

<bundles_post_ra>
// kernel: tpu_custom_call.1
= control target key start
LH: loop header
LB: loop body
LE: loop exit
PB: predicated region body
PF: predicated region fallthrough
CT: control target
= control target key end

     0   :  { %11 = vsyncpa [#allocation4], 0  ;;  %s1726_s0 = inlined_call_operand.hbm [shape: f32[2,8,422], index: 0, kind: input, shape index: {}]   ;;  %s1727_s1 = inlined_call_operand.vmem [shape: f32[8,72], index: 1, kind: input, shape index: {}]   ;;  %s1728_s2 = inlined_call_operand.vmem [shape: f32[8,1], index: 2, kind: input, shape index: {}]   ;;  %s1729_s3 = inlined_call_operand.vmem [shape: f32[8,8], index: 3, kind: input, shape index: {}]   ;;  %s1730_s4 = inlined_call_operand.vmem [shape: f32[8,1], index: 4, kind: input, shape index: {}]   ;;  %s1731_s5 = inlined_call_operand.vmem [shape: f32[1,384], index: 5, kind: input, shape index: {}]   ;;  %s1732_s6 = inlined_call_operand.hbm [shape: f32[2,8,384], index: 6, kind: output, shape index: {}]  }
   0x1   :  { %12 = vsyncpa [#allocation5], 0  ;;  %s1424_s21 = smov [#allocation3]   ;;  %s1376_s25 = scalar_lea.hbm %s1726_s0, 1024 }
   0x2   :  { %s18_s22 = sshll.u32 %s1424_s21, 4  ;;  %p1377_p0 = scmp.ne.s32.totalorder %s1726_s0, %s1376_s25  ;;  %s19_s22 = int_to_ptr.vmem [resolvable:$true] %s18_s22 }
   0x3   :  { %p1380_p1 = scmp.lt.u32.totalorder %s1376_s25, %s1726_s0 }
   0x5   :  { %p1382_p2 = pnand %p1380_p1, %p1377_p0 }
   0x7   :  { %1385 = shalt.err (!%p1382_p2)
}
   0x8   :  { %s1386_s30 = scalar_lea.vmem %s19_s22, 1024  ;;  %p1391_p4 = scmp.lt.s32.totalorder %s19_s22, %s19_s22 }
   0x9   :  { %p1387_p3 = scmp.ne.s32.totalorder %s19_s22, %s1386_s30  ;;  %p1392_p5 = scmp.lt.s32.totalorder %s1386_s30, %s1386_s30 }
   0xb   :  { %p1393_p6 = por %p1392_p5, %p1391_p4 }
   0xd   :  { %p1394_p7 = pnand %p1393_p6, %p1387_p3 }
   0xf   :  { %1397 = shalt.err (!%p1394_p7)
}
  0x10   :  { %s1425_s7 = smov 512   ;;  %s1426_s8 = smov 32  }
  0x11   :  { %24 = dma.hbm_to_vmem [thread:$0]  %s1726_s0, 1024, %s19_s22, [#allocation4], %s1425_s7, %s1425_s7, %s1426_s8  }
  0x12   :  { %1420 = dma.done.wait [#allocation4], 1024  }
  0x13   :  { %1421 = vsyncadd [#allocation4], 4294966272  ;;  %v1427_v0 = vmov 0   ;;  %v1428_v1 = vmov 0.0|0.0   ;;  %v1490_v2 = vld [vmem:[#allocation3 + $0x8] sm:$0xff]  ;;  %v1492_v3 = vld [vmem:[#allocation3 + $0x10] sm:$0xff] }
  0x14   :  { %1297 = vset.pattern.permute.xlu0 %v1427_v0  ;;  %1169 = vmatprep.subr.bf16.mxu1 %v1428_v1  ;;  %v1494_v4 = vld [vmem:[#allocation3] sm:$0xff]  ;;  %v1237_v5 = vpack.i.bf16 %v1492_v3, %v1490_v2  ;;  %v47_v6 = vld [vmem:[#allocation3 + $0x18] sm:$0xff]  ;;  %s1429_s11 = smov 126   ;;  %s1430_s0 = smov 127   ;;  %v1434_v8 = vmov 0.0   ;;  %vm1437_vm0 = vmmov 0  }
  0x15   :  { %v1232_v7 = vpack.i.bf16 %v47_v6, %v1494_v4  ;;  %s1431_s12 = smov 110   ;;  %s1432_s13 = smov 108   ;;  %354 = vmatprep.mubr.f32.mxu0 %v1434_v8  ;;  %1119 = vmatprep.mubr.msk.f32.mxu1 %vm1437_vm0, %v1434_v8  ;;  %v1520_v9 = vld [vmem:[#allocation3 + $0x20] sm:$0xff]  ;;  %v1522_v10 = vld [vmem:[#allocation3 + $0x38] sm:$0xff]  ;;  %v1530_v12 = vld [vmem:[#allocation3 + $0x28] sm:$0xff]  ;;  %vm60_vm1 = vcmask 1039360  }
  0x16   :  { %1238 = vrot.lane.b32.xlu1 %v1237_v5, %s1429_s11  ;;  %1228 = vrot.lane.b32.xlu0 %v1237_v5, %s1430_s0  ;;  %s1433_s14 = smov 109   ;;  %s1435_s15 = smov 91   ;;  %v280_v11 = vld [vmem:[%s1728_s2] sm:$0xff]  ;;  %v1532_v13 = vld [vmem:[#allocation3 + $0x30] sm:$0xff]  ;;  %v1303_v14 = vpack.i.bf16 %v1522_v10, %v1520_v9  ;;  %vm86_vm2 = vcmask 1031168   ;;  %vm112_vm3 = vcmask 900096  }
  0x17   :  { %s1436_s16 = smov 92   ;;  %s1438_s17 = smov 90   ;;  %v1298_v15 = vpack.i.bf16 %v1532_v13, %v1530_v12  ;;  %vm138_vm4 = vcmask 891904   ;;  %vm164_vm5 = vcmask 883712   ;;  %vm190_vm6 = vcmask 752640  }
  0x18   :  { %vm216_vm7 = vcmask 744448   ;;  %vm242_vm8 = vcmask 736256   ;;  %vm286_vm9 = vcmask 588800   ;;  %vm460_vm10 = vcmask 64512  }
  0x1a   :  { %1243 = vrot.lane.b32.xlu1 %v1237_v5, %s1431_s12  ;;  %1233 = vrot.lane.b32.xlu0 %v1232_v7, %s1430_s0 }
  0x1e   :  { %1253 = vrot.lane.b32.xlu1 %v1232_v7, %s1431_s12  ;;  %1248 = vrot.lane.b32.xlu0 %v1232_v7, %s1429_s11 }
  0x22   :  { %1263 = vrot.lane.b32.xlu1 %v1237_v5, %s1432_s13  ;;  %1258 = vrot.lane.b32.xlu0 %v1237_v5, %s1433_s14 }
  0x26   :  { %1273 = vrot.lane.b32.xlu1 %v1232_v7, %s1432_s13  ;;  %1268 = vrot.lane.b32.xlu0 %v1232_v7, %s1433_s14 }
  0x2a   :  { %1283 = vrot.lane.b32.xlu1 %v1237_v5, %s1435_s15  ;;  %1278 = vrot.lane.b32.xlu0 %v1237_v5, %s1436_s16 }
  0x2e   :  { %1293 = vrot.lane.b32.xlu1 %v1232_v7, %s1435_s15  ;;  %1288 = vrot.lane.b32.xlu0 %v1232_v7, %s1436_s16 }
  0x32   :  { %238 = vrot.lane.b32.xlu1 %v1492_v3, %s1438_s17  ;;  %236 = vrot.lane.b32.xlu0 %v1490_v2, %s1438_s17 }
  0x36   :  { %240 = vrot.lane.b32.xlu1 %v47_v6, %s1438_s17  ;;  %234 = vrot.lane.b32.xlu0 %v1494_v4, %s1438_s17 }
  0x3a   :  { %283 = vperm.xlu0 %1297, %v280_v11   ;;  %1339 = vrot.lane.b32.xlu1 %v1303_v14, %s1433_s14 }
  0x3e   :  { %1299 = vrot.lane.b32.xlu0 %v1298_v15, %s1430_s0  ;;  %1364 = vrot.lane.b32.xlu1 %v1303_v14, %s1435_s15 }
  0x42   :  { %1304 = vrot.lane.b32.xlu0 %v1303_v14, %s1430_s0  ;;  %744 = vrot.lane.b32.xlu1 %v1532_v13, %s1438_s17 }
  0x46   :  { %1309 = vrot.lane.b32.xlu0 %v1298_v15, %s1429_s11 }
  0x4a   :  { %1314 = vrot.lane.b32.xlu0 %v1298_v15, %s1431_s12 }
  0x4e   :  { %1319 = vrot.lane.b32.xlu0 %v1303_v14, %s1429_s11 }
  0x52   :  { %1324 = vrot.lane.b32.xlu0 %v1303_v14, %s1431_s12 }
  0x56   :  { %1329 = vrot.lane.b32.xlu0 %v1298_v15, %s1433_s14 }
  0x5a   :  { %1334 = vrot.lane.b32.xlu0 %v1298_v15, %s1432_s13 }
  0x5e   :  { %1344 = vrot.lane.b32.xlu0 %v1303_v14, %s1432_s13 }
  0x62   :  { %1349 = vrot.lane.b32.xlu0 %v1298_v15, %s1436_s16 }
  0x66   :  { %1354 = vrot.lane.b32.xlu0 %v1298_v15, %s1435_s15 }
  0x6a   :  { %1359 = vrot.lane.b32.xlu0 %v1303_v14, %s1436_s16 }
  0x6e   :  { %742 = vrot.lane.b32.xlu0 %v1530_v12, %s1438_s17 }
  0x72   :  { %740 = vrot.lane.b32.xlu0 %v1520_v9, %s1438_s17 }
  0x76   :  { %788 = vperm.xlu0 %1297, %v280_v11  }
  0x88   :  { %v1239_v16 = vpop.permute.xlu1 %1238  ;;  %v1229_v17 = vpop.permute.xlu0 %1228 }
  0x89   :  { %v1231_v18 = vunpack.i.h.bf16 %v1229_v17  ;;  %v1230_v19 = vunpack.i.l.bf16 %v1229_v17  ;;  %v1241_v20 = vunpack.i.h.bf16 %v1239_v16  ;;  %v1240_v21 = vunpack.i.l.bf16 %v1239_v16 }
  0x8b   :  { %v62_v22 = vsel %vm60_vm1, %v1230_v19, %v1231_v18  ;;  %v88_v32 = vsel %vm86_vm2, %v1240_v21, %v1241_v20 }
  0x8c   :  { %v1244_v23 = vpop.permute.xlu1 %1243  ;;  %v1234_v24 = vpop.permute.xlu0 %1233  ;;  %v1153_v25 = vpack.c.bf16 %v62_v22, %v1490_v2 }
  0x8d   :  { %v1246_v26 = vunpack.i.h.bf16 %v1244_v23  ;;  %v1245_v27 = vunpack.i.l.bf16 %v1244_v23  ;;  %v1236_v28 = vunpack.i.h.bf16 %v1234_v24  ;;  %v1235_v29 = vunpack.i.l.bf16 %v1234_v24 }
  0x8e   :  { %1154 = vmatprep.subr.bf16.mxu0 %v1153_v25 }
  0x8f   :  { %v61_v30 = vsel %vm60_vm1, %v1235_v29, %v1230_v19  ;;  %v63_v31 = vsel %vm60_vm1, %v1231_v18, %v1236_v28  ;;  %v114_v33 = vsel %vm112_vm3, %v1245_v27, %v1246_v26 }
  0x90   :  { %v1254_v34 = vpop.permute.xlu1 %1253  ;;  %v1249_v35 = vpop.permute.xlu0 %1248  ;;  %v1155_v36 = vpack.c.bf16 %v61_v30, %v1494_v4  ;;  %v1170_v37 = vpack.c.bf16 %v63_v31, %v1492_v3  ;;  %v1157_v38 = vpack.c.bf16 %v114_v33, %v88_v32 }
  0x91   :  { %v1256_v39 = vunpack.i.h.bf16 %v1254_v34  ;;  %v1255_v40 = vunpack.i.l.bf16 %v1254_v34  ;;  %v1251_v41 = vunpack.i.h.bf16 %v1249_v35  ;;  %v1250_v42 = vunpack.i.l.bf16 %v1249_v35 }
  0x92   :  { %1156 = vmatpush1.bf16.msra.mxu0 %v1155_v36  ;;  %1171 = vmatpush3.bf16.msra.mxu1 %v1170_v37 }
  0x93   :  { %1158 = vmatprep.subr.bf16.mxu0 %v1157_v38  ;;  %1172 = vmatprep.subr.bf16.mxu1 %v1428_v1  ;;  %v87_v43 = vsel %vm86_vm2, %v1250_v42, %v1240_v21  ;;  %v113_v44 = vsel %vm112_vm3, %v1255_v40, %v1245_v27  ;;  %v89_v45 = vsel %vm86_vm2, %v1241_v20, %v1251_v41  ;;  %v1590_v38 = vld [vmem:[%s1727_s1] sm:$0xff] }
  0x94   :  { %v1264_v46 = vpop.permute.xlu1 %1263  ;;  %v1259_v47 = vpop.permute.xlu0 %1258  ;;  %v1159_v48 = vpack.c.bf16 %v113_v44, %v87_v43  ;;  %v115_v49 = vsel %vm112_vm3, %v1246_v26, %v1256_v39 }
  0x95   :  { %v1266_v50 = vunpack.i.h.bf16 %v1264_v46  ;;  %v1265_v51 = vunpack.i.l.bf16 %v1264_v46  ;;  %v1261_v52 = vunpack.i.h.bf16 %v1259_v47  ;;  %v1260_v53 = vunpack.i.l.bf16 %v1259_v47 }
  0x96   :  { %1160 = vmatpush1.bf16.msra.mxu0 %v1159_v48  ;;  %v1173_v54 = vpack.c.bf16 %v115_v49, %v89_v45 }
  0x97   :  { %v140_v55 = vsel %vm138_vm4, %v1260_v53, %v1261_v52  ;;  %v166_v56 = vsel %vm164_vm5, %v1265_v51, %v1266_v50 }
  0x98   :  { %1174 = vmatpush3.bf16.msra.mxu1 %v1173_v54  ;;  %v1274_v57 = vpop.permute.xlu1 %1273  ;;  %v1269_v58 = vpop.permute.xlu0 %1268  ;;  %v1161_v59 = vpack.c.bf16 %v166_v56, %v140_v55 }
  0x99   :  { %v1276_v60 = vunpack.i.h.bf16 %v1274_v57  ;;  %v1275_v61 = vunpack.i.l.bf16 %v1274_v57  ;;  %v1271_v62 = vunpack.i.h.bf16 %v1269_v58  ;;  %v1270_v63 = vunpack.i.l.bf16 %v1269_v58  ;;  %1175 = vmatprep.subr.bf16.mxu1 %v1428_v1 }
  0x9a   :  { %1162 = vmatprep.subr.bf16.mxu0 %v1161_v59 }
  0x9b   :  { %v139_v0 = vsel %vm138_vm4, %v1270_v63, %v1260_v53  ;;  %v165_v2 = vsel %vm164_vm5, %v1275_v61, %v1265_v51  ;;  %v141_v3 = vsel %vm138_vm4, %v1261_v52, %v1271_v62  ;;  %v167_v4 = vsel %vm164_vm5, %v1266_v50, %v1276_v60 }
  0x9c   :  { %v1284_v5 = vpop.permute.xlu1 %1283  ;;  %v1279_v6 = vpop.permute.xlu0 %1278  ;;  %v1163_v7 = vpack.c.bf16 %v165_v2, %v139_v0  ;;  %v1176_v11 = vpack.c.bf16 %v167_v4, %v141_v3 }
  0x9d   :  { %v1286_v14 = vunpack.i.h.bf16 %v1284_v5  ;;  %v1285_v15 = vunpack.i.l.bf16 %v1284_v5  ;;  %v1281_v16 = vunpack.i.h.bf16 %v1279_v6  ;;  %v1280_v17 = vunpack.i.l.bf16 %v1279_v6 }
  0x9e   :  { %1164 = vmatpush1.bf16.msra.mxu0 %v1163_v7  ;;  %1177 = vmatpush3.bf16.msra.mxu1 %v1176_v11 }
  0x9f   :  { %v192_v18 = vsel %vm190_vm6, %v1280_v17, %v1281_v16  ;;  %v218_v19 = vsel %vm216_vm7, %v1285_v15, %v1286_v14  ;;  %1178 = vmatprep.subr.bf16.mxu1 %v1428_v1 }
  0xa0   :  { %v1294_v20 = vpop.permute.xlu1 %1293  ;;  %v1289_v21 = vpop.permute.xlu0 %1288  ;;  %v1165_v22 = vpack.c.bf16 %v218_v19, %v192_v18 }
  0xa1   :  { %v1296_v23 = vunpack.i.h.bf16 %v1294_v20  ;;  %v1295_v24 = vunpack.i.l.bf16 %v1294_v20  ;;  %v1291_v25 = vunpack.i.h.bf16 %v1289_v21  ;;  %v1290_v26 = vunpack.i.l.bf16 %v1289_v21 }
  0xa2   :  { %1166 = vmatprep.subr.bf16.mxu0 %v1165_v22 }
  0xa3   :  { %v191_v27 = vsel %vm190_vm6, %v1290_v26, %v1280_v17  ;;  %v217_v28 = vsel %vm216_vm7, %v1295_v24, %v1285_v15  ;;  %v193_v29 = vsel %vm190_vm6, %v1281_v16, %v1291_v25  ;;  %v219_v30 = vsel %vm216_vm7, %v1286_v14, %v1296_v23 }
  0xa4   :  { %v239_v31 = vpop.permute.xlu1 %238  ;;  %v237_v32 = vpop.permute.xlu0 %236  ;;  %v1167_v33 = vpack.c.bf16 %v217_v28, %v191_v27  ;;  %v1179_v34 = vpack.c.bf16 %v219_v30, %v193_v29 }
  0xa5   :  { %v244_v35 = vsel %vm242_vm8, %v237_v32, %v239_v31 }
  0xa6   :  { %1168 = vmatpush1.bf16.msra.mxu0 %v1167_v33  ;;  %1180 = vmatpush3.bf16.msra.mxu1 %v1179_v34 }
  0xa7   :  { %306 = vmatprep.subr.mxu0 %v244_v35  ;;  %1117 = vmatprep.subr.mxu1 %v1434_v8 }
  0xa8   :  { %v241_v36 = vpop.permute.xlu1 %240  ;;  %v235_v37 = vpop.permute.xlu0 %234 }
  0xa9   :  { %v243_v39 = vsel %vm242_vm8, %v235_v37, %v237_v32  ;;  %v245_v40 = vsel %vm242_vm8, %v239_v31, %v241_v36 }
  0xaa   :  { %307 = vmatpush1.msra.mxu0 %v243_v39  ;;  %1118 = vmatpush3.msra.mxu1 %v245_v40 }
  0xab   :  { %1071 = vmatmul.mubr.msk.f32.vlgmr.msra.gmra.mrb[0].mxu0 %vm286_vm9, %v1590_v38  ;;  %1120 = vmatmul.mubr.msk.f32.vlgmr.msra.gmra.mrb[0].mxu1 %vm286_vm9, %v1590_v38 }
  0xac   :  { %858 = vmatprep.mubr.f32.mxu1 %v1434_v8  ;;  %1122 = vmatprep.subr.mxu0 %v1434_v8  ;;  %v1340_v5 = vpop.permute.xlu1 %1339 }
  0xad   :  { %1124 = vmatprep.mubr.msk.f32.mxu0 %vm1437_vm0, %v1434_v8  ;;  %v1342_v11 = vunpack.i.h.bf16 %v1340_v5  ;;  %v1341_v23 = vunpack.i.l.bf16 %v1340_v5 }
  0xb0   :  { %v1365_v39 = vpop.permute.xlu1 %1364 }
  0xb1   :  { %v1367_v40 = vunpack.i.h.bf16 %v1365_v39 }
  0xb9   :  { %v1602_v41 = vpop.permute.xlu0 %283 }
  0xbd   :  { %v1300_v42 = vpop.permute.xlu0 %1299 }
  0xbe   :  { %v1302_v43 = vunpack.i.h.bf16 %v1300_v42  ;;  %v1301_v44 = vunpack.i.l.bf16 %v1300_v42 }
  0xc0   :  { %v574_v45 = vsel %vm60_vm1, %v1301_v44, %v1302_v43 }
  0xc1   :  { %v1305_v46 = vpop.permute.xlu0 %1304  ;;  %v1181_v47 = vpack.c.bf16 %v574_v45, %v1530_v12  ;;  %v1366_v45 = vunpack.i.l.bf16 %v1365_v39 }
  0xc2   :  { %v1307_v48 = vunpack.i.h.bf16 %v1305_v46  ;;  %v1306_v49 = vunpack.i.l.bf16 %v1305_v46 }
  0xc3   :  { %1182 = vmatprep.subr.bf16.mxu1 %v1181_v47 }
  0xc4   :  { %v573_v50 = vsel %vm60_vm1, %v1306_v49, %v1301_v44  ;;  %v1608_v51 = vsel %vm60_vm1, %v1302_v43, %v1307_v48 }
  0xc5   :  { %v1183_v52 = vpack.c.bf16 %v573_v50, %v1520_v9  ;;  %v1310_v53 = vpop.permute.xlu0 %1309 }
  0xc6   :  { %v1312_v54 = vunpack.i.h.bf16 %v1310_v53  ;;  %v1311_v55 = vunpack.i.l.bf16 %v1310_v53 }
  0xc7   :  { %1184 = vmatpush1.bf16.msra.mxu1 %v1183_v52 }
  0xc8   :  { %v599_v59 = vsel %vm86_vm2, %v1311_v55, %v1312_v54 }
  0xc9   :  { %v1315_v56 = vpop.permute.xlu0 %1314 }
  0xca   :  { %v1317_v57 = vunpack.i.h.bf16 %v1315_v56  ;;  %v1316_v58 = vunpack.i.l.bf16 %v1315_v56 }
  0xcc   :  { %v624_v12 = vsel %vm112_vm3, %v1316_v58, %v1317_v57 }
  0xcd   :  { %v1320_v60 = vpop.permute.xlu0 %1319  ;;  %v1185_v61 = vpack.c.bf16 %v624_v12, %v599_v59 }
  0xce   :  { %v1322_v62 = vunpack.i.h.bf16 %v1320_v60  ;;  %v1321_v63 = vunpack.i.l.bf16 %v1320_v60 }
  0xcf   :  { %1186 = vmatprep.subr.bf16.mxu1 %v1185_v61 }
  0xd0   :  { %v1614_v0 = vsel %vm86_vm2, %v1312_v54, %v1322_v62  ;;  %v598_v2 = vsel %vm86_vm2, %v1321_v63, %v1311_v55  ;;  %v745_v55 = vpop.permute.xlu1 %744  ;;  %v436_v63 = vlaneseq }
  0xd1   :  { %v1325_v9 = vpop.permute.xlu0 %1324 }
  0xd2   :  { %v1327_v3 = vunpack.i.h.bf16 %v1325_v9  ;;  %v1326_v4 = vunpack.i.l.bf16 %v1325_v9  ;;  %v1651_v9 = vshrl.u32 %v436_v63, 7 }
  0xd4   :  { %v623_v6 = vsel %vm112_vm3, %v1326_v4, %v1316_v58  ;;  %v1619_v7 = vsel %vm112_vm3, %v1317_v57, %v1327_v3  ;;  %v434_v3 = vld [vmem:[%s1731_s5] sm:$0x7]  ;;  %v442_v4 = vsub.s32 1, %v1651_v9 }
  0xd5   :  { %v1187_v14 = vpack.c.bf16 %v623_v6, %v598_v2  ;;  %v1201_v15 = vpack.c.bf16 %v1619_v7, %v1614_v0  ;;  %v1330_v16 = vpop.permute.xlu0 %1329  ;;  %v438_v2 = vsub.s32 0, %v1651_v9 }
  0xd6   :  { %v1332_v17 = vunpack.i.h.bf16 %v1330_v16  ;;  %v1331_v18 = vunpack.i.l.bf16 %v1330_v16 }
  0xd7   :  { %1188 = vmatpush1.bf16.msra.mxu1 %v1187_v14  ;;  %v439_v16 = vrot.slane %v434_v3, %v438_v2 }
  0xd8   :  { %v1624_v19 = vsel %vm138_vm4, %v1332_v17, %v1342_v11  ;;  %v649_v24 = vsel %vm138_vm4, %v1331_v18, %v1332_v17  ;;  %v648_v30 = vsel %vm138_vm4, %v1341_v23, %v1331_v18  ;;  %v446_v11 = vsub.s32 2, %v1651_v9 }
  0xd9   :  { %v1335_v20 = vpop.permute.xlu0 %1334 }
  0xda   :  { %v1337_v21 = vunpack.i.h.bf16 %v1335_v20  ;;  %v1336_v22 = vunpack.i.l.bf16 %v1335_v20 }
  0xdc   :  { %v674_v25 = vsel %vm164_vm5, %v1336_v22, %v1337_v21 }
  0xdd   :  { %v1345_v26 = vpop.permute.xlu0 %1344  ;;  %v1189_v27 = vpack.c.bf16 %v674_v25, %v649_v24 }
  0xde   :  { %v1347_v28 = vunpack.i.h.bf16 %v1345_v26  ;;  %v1346_v29 = vunpack.i.l.bf16 %v1345_v26  ;;  %v447_v26 = vrot.slane %v434_v3, %v446_v11 }
  0xdf   :  { %1190 = vmatprep.subr.bf16.mxu1 %v1189_v27 }
  0xe0   :  { %v673_v31 = vsel %vm164_vm5, %v1346_v29, %v1336_v22  ;;  %v1631_v32 = vsel %vm164_vm5, %v1337_v21, %v1347_v28  ;;  %v443_v22 = vrot.slane %v434_v3, %v442_v4 }
  0xe1   :  { %v1350_v33 = vpop.permute.xlu0 %1349  ;;  %v1191_v34 = vpack.c.bf16 %v673_v31, %v648_v30  ;;  %v1204_v35 = vpack.c.bf16 %v1631_v32, %v1624_v19 }
  0xe2   :  { %v1352_v36 = vunpack.i.h.bf16 %v1350_v33  ;;  %v1351_v37 = vunpack.i.l.bf16 %v1350_v33 }
  0xe3   :  { %1192 = vmatpush1.bf16.msra.mxu1 %v1191_v34  ;;  %v458_v34 = vld [vmem:[%s1729_s3] sm:$0xff] }
  0xe4   :  { %v699_v46 = vsel %vm190_vm6, %v1351_v37, %v1352_v36 }
  0xe5   :  { %v1355_v42 = vpop.permute.xlu0 %1354 }
  0xe6   :  { %v1357_v43 = vunpack.i.h.bf16 %v1355_v42  ;;  %v1356_v44 = vunpack.i.l.bf16 %v1355_v42 }
  0xe8   :  { %v1637_v47 = vsel %vm216_vm7, %v1357_v43, %v1367_v40  ;;  %v724_v48 = vsel %vm216_vm7, %v1356_v44, %v1357_v43  ;;  %v723_v52 = vsel %vm216_vm7, %v1366_v45, %v1356_v44 }
  0xe9   :  { %v1360_v49 = vpop.permute.xlu0 %1359  ;;  %v1193_v50 = vpack.c.bf16 %v724_v48, %v699_v46 }
  0xea   :  { %v1362_v53 = vunpack.i.h.bf16 %v1360_v49  ;;  %v1361_v54 = vunpack.i.l.bf16 %v1360_v49 }
  0xeb   :  { %1194 = vmatprep.subr.bf16.mxu1 %v1193_v50 }
  0xec   :  { %v698_v56 = vsel %vm190_vm6, %v1361_v54, %v1351_v37  ;;  %v700_v57 = vsel %vm190_vm6, %v1352_v36, %v1362_v53  ;;  %v1198_v37 = vpack.c.bf16 %v1608_v51, %v1532_v13  ;;  %v459_v51 = vld [vmem:[%s1730_s4] sm:$0xff]  ;;  %s1439_s4 = smov [#allocation6]  }
  0xed   :  { %v1195_v58 = vpack.c.bf16 %v723_v52, %v698_v56  ;;  %v1207_v59 = vpack.c.bf16 %v1637_v47, %v700_v57  ;;  %v743_v12 = vpop.permute.xlu0 %742 }
  0xee   :  { %v749_v60 = vsel %vm242_vm8, %v743_v12, %v745_v55 }
  0xef   :  { %1196 = vmatpush1.bf16.msra.mxu1 %v1195_v58 }
  0xf0   :  { %810 = vmatprep.subr.mxu1 %v749_v60 }
  0xf1   :  { %v741_v61 = vpop.permute.xlu0 %740 }
  0xf2   :  { %v748_v62 = vsel %vm242_vm8, %v741_v61, %v743_v12 }
  0xf3   :  { %811 = vmatpush1.msra.mxu1 %v748_v62 }
  0xf4   :  { %1074 = vmatmul.mubr.msk.f32.vlgmr.msra.gmra.mrb[2].mxu1 %vm286_vm9, %v1590_v38  ;;  %1148 = vmatprep.subr.mxu1 %v1434_v8 }
  0xf5   :  { %1150 = vmatprep.mubr.msk.f32.mxu1 %vm1437_vm0, %v1434_v8 }
 0x17e   :  { %v356_v5 = vpop.f32.mrb[0].mxu0  ;;  %v427_v6 = vpop.f32.mrb[0].mxu1 }
 0x17f   :  { %v1660_v14 = vadd.f32 %v356_v5, %v1602_v41  ;;  %v358_v17 = vpop.f32.mrb[1].mxu0  ;;  %v1663_v18 = vadd.f32 %v427_v6, %v1602_v41  ;;  %v1121_v20 = vpop.f32.mrb[1].mxu1 }
 0x180   :  { %v1666_v21 = vadd.f32 %v358_v17, %v1602_v41 }
 0x181   :  { %v431_v23 = vmax.f32 %v1660_v14, 0.0  ;;  %v433_v25 = vmax.f32 %v1663_v18, 0.0 }
 0x182   :  { %v432_v24 = vmax.f32 %v1666_v21, 0.0 }
 0x183   :  { %v451_v27 = vmul.f32 %v439_v16, %v431_v23  ;;  %v453_v29 = vmul.f32 %v447_v26, %v433_v25 }
 0x184   :  { %v452_v28 = vmul.f32 %v443_v22, %v432_v24 }
 0x186   :  { %v454_v30 = vadd.f32 %v452_v28, %v451_v27 }
 0x188   :  { %v455_v41 = vadd.f32 %v454_v30, %v453_v29 }
 0x18a   :  { %456 = vadd.xlane.f32.xlu1 %v455_v41 }
 0x19b   :  { %746 = vrot.lane.b32.xlu1 %v1522_v10, %s1438_s17 }
 0x1c7   :  { %v860_v31 = vpop.f32.mrb[2].mxu1 }
 0x1c8   :  { %v862_v33 = vpop.f32.mrb[3].mxu1 }
 0x217   :  { %v457_v36 = vpop.xlane.xlu1 %456 }
 0x218   :  { %1123 = vmatpush3.msra.mxu0 %v457_v36 }
 0x219   :  { %1125 = vmatmul.mubr.msk.f32.vlgmr.msra.gmra.mrb[2].mxu0 %vm460_vm10, %v458_v34  ;;  %1197 = vmatprep.subr.bf16.mxu0 %v1428_v1 }
 0x21a   :  { %1199 = vmatpush3.bf16.msra.mxu0 %v1198_v37  ;;  %1145 = vmatprep.mubr.msk.f32.mxu0 %vm1437_vm0, %v1434_v8 }
 0x21b   :  { %1200 = vmatprep.subr.bf16.mxu0 %v1428_v1  ;;  %v747_v10 = vpop.permute.xlu1 %746 }
 0x21c   :  { %v750_v13 = vsel %vm242_vm8, %v745_v55, %v747_v10 }
 0x21e   :  { %1202 = vmatpush3.bf16.msra.mxu0 %v1201_v15 }
 0x21f   :  { %1203 = vmatprep.subr.bf16.mxu0 %v1428_v1 }
 0x222   :  { %1205 = vmatpush3.bf16.msra.mxu0 %v1204_v35 }
 0x223   :  { %1206 = vmatprep.subr.bf16.mxu0 %v1428_v1  ;;  %v789_v1 = vpop.permute.xlu0 %788 }
 0x224   :  { %v861_v35 = vadd.f32 %v860_v31, %v789_v1  ;;  %v863_v39 = vadd.f32 %v862_v33, %v789_v1 }
 0x226   :  { %1208 = vmatpush3.bf16.msra.mxu0 %v1207_v59  ;;  %v935_v40 = vmax.f32 %v861_v35, 0.0 }
 0x227   :  { %1143 = vmatprep.subr.mxu0 %v1434_v8  ;;  %v938_v8 = vld [vmem:[%s1731_s5] sm:$0x7]  ;;  %s1059_s5 = sshll.u32 %s1439_s4, 4  ;;  %s1060_s5 = int_to_ptr.vmem [resolvable:$true] %s1059_s5 }
 0x228   :  { %v943_v42 = vrot.slane %v938_v8, %v438_v2  ;;  %v947_v43 = vrot.slane %v938_v8, %v442_v4  ;;  %v951_v50 = vrot.slane %v938_v8, %v446_v11  ;;  %s1398_s27 = scalar_lea.vmem %s1060_s5, 768  ;;  %p1403_p9 = scmp.lt.s32.totalorder %s1060_s5, %s1060_s5 }
 0x229   :  { %p1399_p8 = scmp.ne.s32.totalorder %s1060_s5, %s1398_s27  ;;  %p1404_p10 = scmp.lt.s32.totalorder %s1398_s27, %s1398_s27 }
 0x22a   :  { %1144 = vmatpush3.msra.mxu0 %v750_v13  ;;  %v955_v47 = vmul.f32 %v943_v42, %v935_v40 }
 0x22b   :  { %1146 = vmatmul.mubr.msk.f32.vlgmr.msra.gmra.mrb[4].mxu0 %vm286_vm9, %v1590_v38  ;;  %v936_v38 = vmax.f32 %v863_v39, 0.0  ;;  %p1405_p11 = por %p1404_p10, %p1403_p9 }
 0x22d   :  { %v956_v48 = vmul.f32 %v947_v43, %v936_v38  ;;  %p1406_p12 = pnand %p1405_p11, %p1399_p8 }
 0x22f   :  { %v958_v55 = vadd.f32 %v956_v48, %v955_v47 }
 0x2ec   :  { %v530_v0 = vpop.f32.mrb[2].mxu0 }
 0x2ed   :  { %v531_v7 = vadd.f32 %v530_v0, %v459_v51  ;;  %v1126_v15 = vpop.f32.mrb[3].mxu0 }
 0x2ef   :  { %v534_v19 = vsub.f32 0.0, %v531_v7 }
 0x2f1   :  { %v535_v32 = vmul.f32 1.442695, %v534_v19 }
 0x2f3   :  { %1368 = vpow2.f32 %v535_v32 }
 0x2fd   :  { %v1369_v44 = vpop.eup %1368 }
 0x2fe   :  { %v537_v45 = vadd.f32 1.0, %v1369_v44  ;;  %v931_v46 = vpop.f32.mrb[4].mxu0 }
 0x2ff   :  { %v932_v49 = vadd.f32 %v931_v46, %v789_v1  ;;  %v1147_v52 = vpop.f32.mrb[5].mxu0 }
 0x300   :  { %1370 = vrcp.f32 %v537_v45 }
 0x301   :  { %v937_v53 = vmax.f32 %v932_v49, 0.0 }
 0x303   :  { %v957_v54 = vmul.f32 %v951_v50, %v937_v53 }
 0x305   :  { %v959_v56 = vadd.f32 %v958_v55, %v957_v54 }
 0x307   :  { %960 = vadd.xlane.f32.xlu1 %v959_v56 }
 0x30a   :  { %v1371_v57 = vpop.eup %1370 }
 0x30b   :  { %541 = vperm.xlu0 %1297, %v1371_v57  }
 0x38a   :  { %v542_v58 = vpop.permute.xlu0 %541 }
 0x38b   :  { %v544_v59 = vmul.f32 %v542_v58, %v431_v23  ;;  %v545_v12 = vmul.f32 %v542_v58, %v432_v24  ;;  %v546_v60 = vmul.f32 %v542_v58, %v433_v25 }
 0x38d   :  { %547 = vst [vmem:[#allocation6] sm:$0xff] %v544_v59  ;;  %548 = vst [vmem:[#allocation6 + $0x8] sm:$0xff] %v545_v12 }
 0x38e   :  { %549 = vst [vmem:[#allocation6 + $0x10] sm:$0xff] %v546_v60 }
 0x394   :  { %v961_v61 = vpop.xlane.xlu1 %960 }
 0x395   :  { %1149 = vmatpush3.msra.mxu1 %v961_v61 }
 0x396   :  { %1151 = vmatmul.mubr.msk.f32.vlgmr.msra.gmra.mrb[4].mxu1 %vm460_vm10, %v458_v34 }
 0x469   :  { %v1033_v62 = vpop.f32.mrb[4].mxu1 }
 0x46a   :  { %v1034_v63 = vadd.f32 %v1033_v62, %v459_v51  ;;  %v1152_v9 = vpop.f32.mrb[5].mxu1 }
 0x46c   :  { %v1037_v2 = vsub.f32 0.0, %v1034_v63 }
 0x46e   :  { %v1038_v3 = vmul.f32 1.442695, %v1037_v2 }
 0x470   :  { %1372 = vpow2.f32 %v1038_v3 }
 0x47a   :  { %v1373_v4 = vpop.eup %1372 }
 0x47b   :  { %v1040_v5 = vadd.f32 1.0, %v1373_v4 }
 0x47d   :  { %1374 = vrcp.f32 %v1040_v5 }
 0x487   :  { %v1375_v6 = vpop.eup %1374 }
 0x488   :  { %1044 = vperm.xlu0 %1297, %v1375_v6  }
 0x507   :  { %v1045_v11 = vpop.permute.xlu0 %1044 }
 0x508   :  { %v1047_v14 = vmul.f32 %v1045_v11, %v935_v40  ;;  %v1048_v16 = vmul.f32 %v1045_v11, %v936_v38  ;;  %v1049_v17 = vmul.f32 %v1045_v11, %v937_v53 }
 0x50a   :  { %1051 = vst [vmem:[#allocation6 + $0x18] sm:$0xff] %v1047_v14  ;;  %1052 = vst [vmem:[#allocation6 + $0x20] sm:$0xff] %v1048_v16 }
 0x50b   :  { %1053 = vst [vmem:[#allocation6 + $0x28] sm:$0xff] %v1049_v17 }
 0x50c   :  { %1409 = shalt.err (!%p1406_p12)
}
 0x50d   :  { %s1410_s30 = scalar_lea.hbm %s1732_s6, 768 }
 0x50e   :  { %p1411_p13 = scmp.ne.s32.totalorder %s1732_s6, %s1410_s30  ;;  %p1414_p0 = scmp.lt.u32.totalorder %s1410_s30, %s1732_s6 }
 0x510   :  { %p1416_p1 = pnand %p1414_p0, %p1411_p13 }
 0x512   :  { %1419 = shalt.err (!%p1416_p1)
}
 0x513   :  { %s1440_s11 = smov 384   ;;  %s1441_s0 = smov 24  }
 0x514   :  { %1065 = dma.vmem_to_hbm [thread:$0]  %s1060_s5, 768, %s1732_s6, [#allocation5], %s1440_s11, %s1440_s11, %s1441_s0  }
 0x515   :  { %1422 = dma.done.wait [#allocation5], 768  }
 0x516   :  { %1423 = vsyncadd [#allocation5], 4294966528 }
 0x517   :  { %1069 = vsyncpa [#allocation4], 1 }
 0x518   :  { %1070 = vsyncpa [#allocation5], 1 }

</bundles_post_ra>
